<compile_context>
chip_gen: v7x
topology: tpu7x:2x2x1
jax: 0.10.0
libtpu: 0.0.40
codegen_flags: <defaults>
</compile_context>

<pallas_src>
import functools

import jax
import jax.numpy as jnp
from jax.experimental import pallas as pl
from jax.experimental.pallas import tpu as pltpu

EPS = 1e-5
IN_FEATURES = 784
HIDDEN = 512
NUM_CLASSES = 10
N_PAD = 128          # 10 rounded up to 128 for lane-dense output stores
TB_MAX = 1024        # largest batch tile (fits v5e scoped VMEM with f32 x)


def _round_up(n, m):
    return ((n + m - 1) // m) * m


def dnn_kernel(x_ref, w1_ref, b1_ref, w2_ref, b2_ref, out_ref):
    # Layer 1 (eval-mode BN folded into w1/b1): Linear + bias + ReLU.
    x = x_ref[...].astype(jnp.bfloat16)          # cast in-kernel, no HBM copy
    h = jnp.dot(x, w1_ref[...], preferred_element_type=jnp.float32)
    h = jnp.maximum(h + b1_ref[...], 0.0)
    # Layer 2: Linear into the lane-padded (128-wide) class dimension.
    out = jnp.dot(h.astype(jnp.bfloat16), w2_ref[...],
                  preferred_element_type=jnp.float32)
    out_ref[...] = out + b2_ref[...]


def prepare_params(params):
    """One-time parameter prep: fold eval-mode BN into layer-1 weights, pad the
    class dim (10->128) for lane-dense stores, cast weights to bf16."""
    (w1, b1, gamma, beta, run_mean, run_var, w2, b2) = params
    scale = gamma * jax.lax.rsqrt(run_var + EPS)                   # (1, 512)
    w1f = (w1 * scale).astype(jnp.bfloat16)                        # scale cols
    b1f = ((b1 - run_mean) * scale + beta).astype(jnp.float32)
    w2p = jnp.pad(w2, ((0, 0), (0, N_PAD - NUM_CLASSES))).astype(jnp.bfloat16)
    b2p = jnp.pad(b2, ((0, 0), (0, N_PAD - NUM_CLASSES))).astype(jnp.float32)
    return w1f, b1f, w2p, b2p


@functools.partial(jax.jit, static_argnames=("tb_max",))
def dnn_forward(x, prepped, *, tb_max=TB_MAX):
    """x: (B, 1, 28, 28) float32 (NCHW). Returns logits (B, 10) float32."""
    w1p, b1p, w2p, b2p = prepped
    B = x.shape[0]
    x_flat = x.reshape(B, -1).astype(jnp.float32)   # x.view(x.size(0), -1)
    assert x_flat.shape[1] == IN_FEATURES

    # Adaptive batch tile: pad B only up to the layout minimum (sublane = 8),
    # capped at TB_MAX for large batches.
    tb = min(tb_max, _round_up(B, 8))
    bp = pl.cdiv(B, tb) * tb
    xp = x_flat if bp == B else jnp.pad(x_flat, ((0, bp - B), (0, 0)))

    out = pl.pallas_call(
        dnn_kernel,
        out_shape=jax.ShapeDtypeStruct((bp, N_PAD), jnp.float32),
        grid_spec=pltpu.PrefetchScalarGridSpec(
            num_scalar_prefetch=0,
            grid=(bp // tb,),
            in_specs=[
                pl.BlockSpec((tb, IN_FEATURES), lambda i: (i, 0)),      # x tile
                pl.BlockSpec((IN_FEATURES, HIDDEN), lambda i: (0, 0)),  # w1
                pl.BlockSpec((1, HIDDEN), lambda i: (0, 0)),            # b1
                pl.BlockSpec((HIDDEN, N_PAD), lambda i: (0, 0)),        # w2
                pl.BlockSpec((1, N_PAD), lambda i: (0, 0)),             # b2
            ],
            out_specs=pl.BlockSpec((tb, N_PAD), lambda i: (i, 0)),
        ),
        compiler_params=pltpu.CompilerParams(
            dimension_semantics=("parallel",),
            vmem_limit_bytes=32 * 1024 * 1024),
    )(xp, w1p, b1p, w2p, b2p)

    return out[:B, :NUM_CLASSES]


def init_params(key):
    """Deterministic parameter init matching the module's shapes (non-trivial
    BN running stats so the BN fold is actually exercised)."""
    k1, k2, k3, k4, k5, k6, k7, k8 = jax.random.split(key, 8)
    # Linear(784, 512): PyTorch stores (512, 784); we store transposed.
    bound1 = 1.0 / jnp.sqrt(784.0)
    w1 = jax.random.uniform(k1, (IN_FEATURES, HIDDEN), jnp.float32, -bound1, bound1)
    b1 = jax.random.uniform(k2, (1, HIDDEN), jnp.float32, -bound1, bound1)
    gamma = jax.random.uniform(k5, (1, HIDDEN), jnp.float32, 0.5, 1.5)
    beta = jax.random.uniform(k6, (1, HIDDEN), jnp.float32, -0.1, 0.1)
    run_mean = jax.random.uniform(k7, (1, HIDDEN), jnp.float32, -0.5, 0.5)
    run_var = jax.random.uniform(k8, (1, HIDDEN), jnp.float32, 0.5, 1.5)
    # Linear(512, 10): stored transposed (512, 10).
    bound2 = 1.0 / jnp.sqrt(512.0)
    w2 = jax.random.uniform(k3, (HIDDEN, NUM_CLASSES), jnp.float32, -bound2, bound2)
    b2 = jax.random.uniform(k4, (1, NUM_CLASSES), jnp.float32, -bound2, bound2)
    return (w1, b1, gamma, beta, run_mean, run_var, w2, b2)


def reference_forward_f32(x, params):
    """Pure-f32 reference with PyTorch eval-mode BN semantics."""
    (w1, b1, gamma, beta, run_mean, run_var, w2, b2) = params
    xf = x.reshape(x.shape[0], -1)
    h = xf @ w1 + b1
    h = (h - run_mean) * jax.lax.rsqrt(run_var + EPS) * gamma + beta
    h = jnp.maximum(h, 0.0)
    return h @ w2 + b2


def reference_forward_matched(x, prepped):
    """Plain-JAX reference with the same folded/padded/bf16 params as the kernel."""
    w1p, b1p, w2p, b2p = prepped
    xf = x.reshape(x.shape[0], -1).astype(jnp.bfloat16)
    h = jnp.dot(xf, w1p, preferred_element_type=jnp.float32) + b1p
    h = jnp.maximum(h, 0.0).astype(jnp.bfloat16)
    out = jnp.dot(h, w2p, preferred_element_type=jnp.float32) + b2p
    return out[:, :NUM_CLASSES]


if __name__ == "__main__":
    key = jax.random.PRNGKey(0)
    kx, kp = jax.random.split(key)

    # Small deterministic input, NCHW like FashionMNIST batches: (B, 1, 28, 28).
    B = 8
    x = jax.random.normal(kx, (B, 1, 28, 28), jnp.float32)
    params = init_params(kp)
    prepped = prepare_params(params)

    out = dnn_forward(x, prepped)
    out = jax.block_until_ready(out)
    assert out.shape == (B, NUM_CLASSES)

    # Tight check vs. a precision-matched (bf16 folded/padded) reference.
    ref_matched = reference_forward_matched(x, prepped)
    assert jnp.allclose(out, ref_matched, atol=2e-3, rtol=2e-3), \
        "mismatch vs matched bf16 reference"

    # Loose check vs. the pure-f32 eval-mode BN reference (validates the fold).
    ref_f32 = reference_forward_f32(x, params)
    assert jnp.allclose(out, ref_f32, atol=5e-2, rtol=5e-2), \
        "mismatch vs f32 eval-mode reference"

    print("KERNEL_OK")
</pallas_src>

<mosaic_0001>
module attributes {stable_mosaic.version = 11 : i64} {
  func.func @dnn_kernel(%arg0: i32, %arg1: memref<8x784xf32, #tpu.memory_space<vmem>>, %arg2: memref<784x512xbf16, #tpu.memory_space<vmem>>, %arg3: memref<1x512xf32, #tpu.memory_space<vmem>>, %arg4: memref<512x128xbf16, #tpu.memory_space<vmem>>, %arg5: memref<1x128xf32, #tpu.memory_space<vmem>>, %arg6: memref<8x128xf32, #tpu.memory_space<vmem>>) attributes {dimension_semantics = [#tpu.dimension_semantics<parallel>], iteration_bounds = array<i64: 1>, scalar_prefetch = 0 : i64, scratch_operands = 0 : i64, tpu.core_type = #tpu.core_type<tc>, window_params = [{transform_indices = @transform_0, window_bounds = array<i64: 8, 784>}, {pipeline_mode = #tpu.pipeline_mode<synchronous>, transform_indices = @transform_1, window_bounds = array<i64: 784, 512>}, {pipeline_mode = #tpu.pipeline_mode<synchronous>, transform_indices = @transform_2, window_bounds = array<i64: 1, 512>}, {pipeline_mode = #tpu.pipeline_mode<synchronous>, transform_indices = @transform_3, window_bounds = array<i64: 512, 128>}, {pipeline_mode = #tpu.pipeline_mode<synchronous>, transform_indices = @transform_4, window_bounds = array<i64: 1, 128>}, {transform_indices = @transform_5, window_bounds = array<i64: 8, 128>}]} {
    %c0 = arith.constant 0 : index
    %c0_0 = arith.constant 0 : index
    %0 = vector.load %arg1[%c0, %c0_0] : memref<8x784xf32, #tpu.memory_space<vmem>>, vector<8x784xf32>
    %1 = arith.truncf %0 : vector<8x784xf32> to vector<8x784xbf16>
    %c0_1 = arith.constant 0 : index
    %c0_2 = arith.constant 0 : index
    %2 = vector.load %arg2[%c0_1, %c0_2] : memref<784x512xbf16, #tpu.memory_space<vmem>>, vector<784x512xbf16>
    %cst = arith.constant dense<0.000000e+00> : vector<8x512xf32>
    %3 = tpu.matmul %1, %2, %cst {dimension_numbers = #tpu.dot_dimension_numbers<[1], [0], [0], [1], [0, 0, 1, 1], [], []>} : vector<8x784xbf16>, vector<784x512xbf16>, vector<8x512xf32> -> vector<8x512xf32>
    %c0_3 = arith.constant 0 : index
    %c0_4 = arith.constant 0 : index
    %4 = vector.load %arg3[%c0_3, %c0_4] : memref<1x512xf32, #tpu.memory_space<vmem>>, vector<1x512xf32>
    %5 = vector.broadcast %4 : vector<1x512xf32> to vector<8x512xf32>
    %6 = arith.addf %3, %5 : vector<8x512xf32>
    %cst_5 = arith.constant 0.000000e+00 : f32
    %7 = vector.broadcast %cst_5 : f32 to vector<8x512xf32>
    %8 = arith.maximumf %6, %7 : vector<8x512xf32>
    %9 = arith.truncf %8 : vector<8x512xf32> to vector<8x512xbf16>
    %c0_6 = arith.constant 0 : index
    %c0_7 = arith.constant 0 : index
    %10 = vector.load %arg4[%c0_6, %c0_7] : memref<512x128xbf16, #tpu.memory_space<vmem>>, vector<512x128xbf16>
    %cst_8 = arith.constant dense<0.000000e+00> : vector<8x128xf32>
    %11 = tpu.matmul %9, %10, %cst_8 {dimension_numbers = #tpu.dot_dimension_numbers<[1], [0], [0], [1], [0, 0, 1, 1], [], []>} : vector<8x512xbf16>, vector<512x128xbf16>, vector<8x128xf32> -> vector<8x128xf32>
    %c0_9 = arith.constant 0 : index
    %c0_10 = arith.constant 0 : index
    %12 = vector.load %arg5[%c0_9, %c0_10] : memref<1x128xf32, #tpu.memory_space<vmem>>, vector<1x128xf32>
    %13 = vector.broadcast %12 : vector<1x128xf32> to vector<8x128xf32>
    %14 = arith.addf %11, %13 : vector<8x128xf32>
    %c0_11 = arith.constant 0 : index
    %c0_12 = arith.constant 0 : index
    %15 = vector.load %arg6[%c0_11, %c0_12] : memref<8x128xf32, #tpu.memory_space<vmem>>, vector<8x128xf32>
    tpu.vector_store %arg6[%c0_11, %c0_12], %14 {strides = array<i32>} : memref<8x128xf32, #tpu.memory_space<vmem>>, vector<8x128xf32>,
    return
  }
  func.func @transform_0(%arg0: i32) -> (i32, i32) {
    %c0_i32 = arith.constant 0 : i32
    %c0_i32_0 = arith.constant 0 : i32
    return %arg0, %c0_i32 : i32, i32
  }
  func.func @transform_1(%arg0: i32) -> (i32, i32) {
    %c0_i32 = arith.constant 0 : i32
    %c0_i32_0 = arith.constant 0 : i32
    %c0_i32_1 = arith.constant 0 : i32
    return %c0_i32, %c0_i32_0 : i32, i32
  }
  func.func @transform_2(%arg0: i32) -> (i32, i32) {
    %c0_i32 = arith.constant 0 : i32
    %c0_i32_0 = arith.constant 0 : i32
    %c0_i32_1 = arith.constant 0 : i32
    return %c0_i32, %c0_i32_0 : i32, i32
  }
  func.func @transform_3(%arg0: i32) -> (i32, i32) {
    %c0_i32 = arith.constant 0 : i32
    %c0_i32_0 = arith.constant 0 : i32
    %c0_i32_1 = arith.constant 0 : i32
    return %c0_i32, %c0_i32_0 : i32, i32
  }
  func.func @transform_4(%arg0: i32) -> (i32, i32) {
    %c0_i32 = arith.constant 0 : i32
    %c0_i32_0 = arith.constant 0 : i32
    %c0_i32_1 = arith.constant 0 : i32
    return %c0_i32, %c0_i32_0 : i32, i32
  }
  func.func @transform_5(%arg0: i32) -> (i32, i32) {
    %c0_i32 = arith.constant 0 : i32
    %c0_i32_0 = arith.constant 0 : i32
    return %arg0, %c0_i32 : i32, i32
  }
}

</mosaic_0001>

<bundles_post_ra>
// kernel: dnn_forward.1
= control target key start
LH: loop header
LB: loop body
LE: loop exit
PB: predicated region body
PF: predicated region fallthrough
CT: control target
= control target key end

     0   :  { %10 = vsyncpa [#allocation3], 0  ;;  %s2811_s0 = inlined_call_operand.vmem [shape: f32[8,784], index: 0, kind: input, shape index: {}]   ;;  %s2812_s1 = inlined_call_operand.hbm [shape: bf16[784,512], index: 1, kind: input, shape index: {}]   ;;  %s2813_s2 = inlined_call_operand.vmem [shape: f32[1,512], index: 2, kind: input, shape index: {}]   ;;  %s2814_s3 = inlined_call_operand.vmem [shape: bf16[512,128], index: 3, kind: input, shape index: {}]   ;;  %s2815_s4 = inlined_call_operand.vmem [shape: f32[1,128], index: 4, kind: input, shape index: {}]   ;;  %s2816_s5 = inlined_call_operand.hbm [shape: f32[8,128], index: 5, kind: output, shape index: {}]  }
   0x1   :  { %11 = vsyncpa [#allocation4], 0  ;;  %s2629_s18 = smov [#allocation2]   ;;  %s2581_s22 = scalar_lea.hbm %s2812_s1, 25088 }
   0x2   :  { %s19_s19 = sshll.u32 %s2629_s18, 4  ;;  %p2582_p0 = scmp.ne.s32.totalorder %s2812_s1, %s2581_s22  ;;  %s20_s19 = int_to_ptr.vmem [resolvable:$true] %s19_s19 }
   0x3   :  { %p2585_p1 = scmp.lt.u32.totalorder %s2581_s22, %s2812_s1 }
   0x5   :  { %p2587_p2 = pnand %p2585_p1, %p2582_p0 }
   0x7   :  { %2590 = shalt.err (!%p2587_p2)
}
   0x8   :  { %s2591_s27 = scalar_lea.vmem %s20_s19, 25088  ;;  %p2596_p4 = scmp.lt.s32.totalorder %s20_s19, %s20_s19 }
   0x9   :  { %p2592_p3 = scmp.ne.s32.totalorder %s20_s19, %s2591_s27  ;;  %p2597_p5 = scmp.lt.s32.totalorder %s2591_s27, %s2591_s27 }
   0xb   :  { %p2598_p6 = por %p2597_p5, %p2596_p4 }
   0xd   :  { %p2599_p7 = pnand %p2598_p6, %p2592_p3 }
   0xf   :  { %2602 = shalt.err (!%p2599_p7)
}
  0x10   :  { %s2630_s28 = smov 256   ;;  %s2631_s29 = smov 16  }
  0x11   :  { %25 = dma.hbm_to_vmem [thread:$0]  %s2812_s1, 25088, %s20_s19, [#allocation3], %s2630_s28, %s2630_s28, %s2631_s29  }
  0x12   :  { %2625 = dma.done.wait [#allocation3], 25088  }
  0x13   :  { %2626 = vsyncadd [#allocation3], 4294942208  ;;  %v2255_v0 = vld [vmem:[#allocation2 + $0x4] ss:$16 sps:$4 sm:$0xff]   ;;  %v2257_v1 = vld [vmem:[#allocation2 + $0xc] ss:$16 sps:$4 sm:$0xff]  }
  0x14   :  { %1252 = vmatprep.subr.bf16.mxu0 %v2255_v0  ;;  %v2259_v2 = vld [vmem:[#allocation2] ss:$16 sps:$4 sm:$0xff]   ;;  %v2260_v3 = vld [vmem:[#allocation2 + $0x8] ss:$16 sps:$4 sm:$0xff]   ;;  %1416 = vmatprep.subr.bf16.mxu1 %v2257_v1  ;;  %v2261_v4 = vld [vmem:[#allocation2 + $0x24] ss:$16 sps:$4 sm:$0xff]  }
  0x15   :  { %1253 = vmatpush1.bf16.msra.mxu0 %v2259_v2  ;;  %1417 = vmatpush1.bf16.msra.mxu1 %v2260_v3  ;;  %v2263_v5 = vld [vmem:[#allocation2 + $0x2c] ss:$16 sps:$4 sm:$0xff]   ;;  %v2265_v6 = vld [vmem:[#allocation2 + $0x20] ss:$16 sps:$4 sm:$0xff]   ;;  %v2266_v7 = vld [vmem:[#allocation2 + $0x28] ss:$16 sps:$4 sm:$0xff]  }
  0x16   :  { %1254 = vmatprep.subr.bf16.mxu0 %v2261_v4  ;;  %1418 = vmatprep.subr.bf16.mxu1 %v2263_v5  ;;  %v2267_v8 = vld [vmem:[#allocation2 + $0x44] ss:$16 sps:$4 sm:$0xff]   ;;  %v2269_v9 = vld [vmem:[#allocation2 + $0x4c] ss:$16 sps:$4 sm:$0xff]   ;;  %v2271_v10 = vld [vmem:[#allocation2 + $0x40] ss:$16 sps:$4 sm:$0xff]  }
  0x17   :  { %v2272_v11 = vld [vmem:[#allocation2 + $0x48] ss:$16 sps:$4 sm:$0xff]   ;;  %v2273_v12 = vld [vmem:[#allocation2 + $0x64] ss:$16 sps:$4 sm:$0xff]   ;;  %v2275_v13 = vld [vmem:[#allocation2 + $0x6c] ss:$16 sps:$4 sm:$0xff]  }
  0x18   :  { %v2277_v14 = vld [vmem:[#allocation2 + $0x60] ss:$16 sps:$4 sm:$0xff]   ;;  %v2278_v15 = vld [vmem:[#allocation2 + $0x68] ss:$16 sps:$4 sm:$0xff]   ;;  %v2279_v16 = vld [vmem:[#allocation2 + $0x84] ss:$16 sps:$4 sm:$0xff]  }
  0x19   :  { %1255 = vmatpush1.bf16.msra.mxu0 %v2265_v6  ;;  %1419 = vmatpush1.bf16.msra.mxu1 %v2266_v7  ;;  %v2281_v17 = vld [vmem:[#allocation2 + $0x8c] ss:$16 sps:$4 sm:$0xff]   ;;  %v2283_v18 = vld [vmem:[#allocation2 + $0x80] ss:$16 sps:$4 sm:$0xff]   ;;  %v2284_v19 = vld [vmem:[#allocation2 + $0x88] ss:$16 sps:$4 sm:$0xff]  }
  0x1a   :  { %1256 = vmatprep.subr.bf16.mxu0 %v2267_v8  ;;  %1420 = vmatprep.subr.bf16.mxu1 %v2269_v9  ;;  %v2285_v20 = vld [vmem:[#allocation2 + $0xa4] ss:$16 sps:$4 sm:$0xff]   ;;  %v2287_v21 = vld [vmem:[#allocation2 + $0xac] ss:$16 sps:$4 sm:$0xff]   ;;  %v2289_v22 = vld [vmem:[#allocation2 + $0xa0] ss:$16 sps:$4 sm:$0xff]  }
  0x1b   :  { %v2290_v23 = vld [vmem:[#allocation2 + $0xa8] ss:$16 sps:$4 sm:$0xff]   ;;  %v2291_v24 = vld [vmem:[#allocation2 + $0xc4] ss:$16 sps:$4 sm:$0xff]   ;;  %v2293_v25 = vld [vmem:[#allocation2 + $0xcc] ss:$16 sps:$4 sm:$0xff]  }
  0x1c   :  { %v2295_v26 = vld [vmem:[#allocation2 + $0xc0] ss:$16 sps:$4 sm:$0xff]   ;;  %v2296_v27 = vld [vmem:[#allocation2 + $0xc8] ss:$16 sps:$4 sm:$0xff]   ;;  %v2297_v28 = vld [vmem:[#allocation2 + $0xe4] ss:$16 sps:$4 sm:$0xff]  }
  0x1d   :  { %1257 = vmatpush1.bf16.msra.mxu0 %v2271_v10  ;;  %1421 = vmatpush1.bf16.msra.mxu1 %v2272_v11  ;;  %v2299_v29 = vld [vmem:[#allocation2 + $0xec] ss:$16 sps:$4 sm:$0xff]   ;;  %v2301_v30 = vld [vmem:[#allocation2 + $0xe0] ss:$16 sps:$4 sm:$0xff]   ;;  %v2302_v31 = vld [vmem:[#allocation2 + $0xe8] ss:$16 sps:$4 sm:$0xff]  }
  0x1e   :  { %1258 = vmatprep.subr.bf16.mxu0 %v2273_v12  ;;  %1422 = vmatprep.subr.bf16.mxu1 %v2275_v13  ;;  %v2303_v32 = vld [vmem:[#allocation2 + $0x104] ss:$16 sps:$4 sm:$0xff]   ;;  %v2305_v33 = vld [vmem:[#allocation2 + $0x10c] ss:$16 sps:$4 sm:$0xff]   ;;  %v2307_v34 = vld [vmem:[#allocation2 + $0x100] ss:$16 sps:$4 sm:$0xff]  }
  0x1f   :  { %v2308_v35 = vld [vmem:[#allocation2 + $0x108] ss:$16 sps:$4 sm:$0xff]   ;;  %v2309_v36 = vld [vmem:[#allocation2 + $0x124] ss:$16 sps:$4 sm:$0xff]   ;;  %v2311_v37 = vld [vmem:[#allocation2 + $0x12c] ss:$16 sps:$4 sm:$0xff]  }
  0x20   :  { %v2313_v38 = vld [vmem:[#allocation2 + $0x120] ss:$16 sps:$4 sm:$0xff]   ;;  %v2314_v39 = vld [vmem:[#allocation2 + $0x128] ss:$16 sps:$4 sm:$0xff]   ;;  %v2315_v40 = vld [vmem:[#allocation2 + $0x144] ss:$16 sps:$4 sm:$0xff]  }
  0x21   :  { %1259 = vmatpush1.bf16.msra.mxu0 %v2277_v14  ;;  %1423 = vmatpush1.bf16.msra.mxu1 %v2278_v15  ;;  %v2317_v41 = vld [vmem:[#allocation2 + $0x14c] ss:$16 sps:$4 sm:$0xff]   ;;  %v2319_v42 = vld [vmem:[#allocation2 + $0x140] ss:$16 sps:$4 sm:$0xff]   ;;  %v2320_v43 = vld [vmem:[#allocation2 + $0x148] ss:$16 sps:$4 sm:$0xff]  }
  0x22   :  { %1260 = vmatprep.subr.bf16.mxu0 %v2279_v16  ;;  %1424 = vmatprep.subr.bf16.mxu1 %v2281_v17  ;;  %v2321_v44 = vld [vmem:[#allocation2 + $0x164] ss:$16 sps:$4 sm:$0xff]   ;;  %v2323_v45 = vld [vmem:[#allocation2 + $0x16c] ss:$16 sps:$4 sm:$0xff]   ;;  %v2325_v47 = vld [vmem:[#allocation2 + $0x160] ss:$16 sps:$4 sm:$0xff]  }
  0x23   :  { %v37_v46 = vld [vmem:[%s2811_s0 + $0x8] sm:$0xff]  ;;  %v2327_v50 = vld [vmem:[#allocation2 + $0x184] ss:$16 sps:$4 sm:$0xff]   ;;  %v2331_v52 = vld [vmem:[#allocation2 + $0x180] ss:$16 sps:$4 sm:$0xff]   ;;  %vm1248_vm0 = vcmask 130048  }
  0x24   :  { %v44_v48 = vpack.c.bf16 %v37_v46, %v37_v46  ;;  %v2326_v49 = vld [vmem:[#allocation2 + $0x168] ss:$16 sps:$4 sm:$0xff]   ;;  %v2329_v51 = vld [vmem:[#allocation2 + $0x18c] ss:$16 sps:$4 sm:$0xff]   ;;  %v2333_v54 = vld [vmem:[#allocation2 + $0x1a4] ss:$16 sps:$4 sm:$0xff]  }
  0x25   :  { %1261 = vmatpush1.bf16.msra.mxu0 %v2283_v18  ;;  %1425 = vmatpush1.bf16.msra.mxu1 %v2284_v19  ;;  %v2332_v53 = vld [vmem:[#allocation2 + $0x188] ss:$16 sps:$4 sm:$0xff]   ;;  %v2335_v55 = vld [vmem:[#allocation2 + $0x1ac] ss:$16 sps:$4 sm:$0xff]   ;;  %v2337_v56 = vld [vmem:[#allocation2 + $0x1a0] ss:$16 sps:$4 sm:$0xff]  }
  0x26   :  { %1262 = vmatprep.subr.bf16.mxu0 %v2285_v20  ;;  %1426 = vmatprep.subr.bf16.mxu1 %v2287_v21  ;;  %v2338_v57 = vld [vmem:[#allocation2 + $0x1a8] ss:$16 sps:$4 sm:$0xff]   ;;  %v2339_v58 = vld [vmem:[#allocation2 + $0x1c4] ss:$16 sps:$4 sm:$0xff]   ;;  %v2341_v59 = vld [vmem:[#allocation2 + $0x1cc] ss:$16 sps:$4 sm:$0xff]  }
  0x27   :  { %1284 = vmatprep.mubr.bf16.mxu0 %v44_v48  ;;  %1448 = vmatprep.mubr.bf16.mxu1 %v44_v48  ;;  %v2343_v60 = vld [vmem:[#allocation2 + $0x1c0] ss:$16 sps:$4 sm:$0xff]   ;;  %v2344_v61 = vld [vmem:[#allocation2 + $0x1c8] ss:$16 sps:$4 sm:$0xff]   ;;  %v2345_v62 = vld [vmem:[#allocation2 + $0x1e4] ss:$16 sps:$4 sm:$0xff]  }
  0x28   :  { %v2347_v63 = vld [vmem:[#allocation2 + $0x1ec] ss:$16 sps:$4 sm:$0xff]   ;;  %v2349_v0 = vld [vmem:[#allocation2 + $0x1e0] ss:$16 sps:$4 sm:$0xff]   ;;  %v2350_v1 = vld [vmem:[#allocation2 + $0x1e8] ss:$16 sps:$4 sm:$0xff]  }
  0x29   :  { %1263 = vmatpush1.bf16.msra.mxu0 %v2289_v22  ;;  %1427 = vmatpush1.bf16.msra.mxu1 %v2290_v23  ;;  %v36_v2 = vld [vmem:[%s2811_s0] sm:$0xff]  ;;  %v2356_v4 = vld [vmem:[#allocation2 + $0x20c] ss:$16 sps:$4 sm:$0xff]   ;;  %v2354_v7 = vld [vmem:[#allocation2 + $0x208] ss:$16 sps:$4 sm:$0xff]  }
  0x2a   :  { %1264 = vmatprep.subr.bf16.mxu0 %v2291_v24  ;;  %1428 = vmatprep.subr.bf16.mxu1 %v2293_v25  ;;  %v2353_v3 = vld [vmem:[#allocation2 + $0x204] ss:$16 sps:$4 sm:$0xff]   ;;  %v43_v5 = vpack.c.bf16 %v36_v2, %v36_v2  ;;  %v2351_v6 = vld [vmem:[#allocation2 + $0x200] ss:$16 sps:$4 sm:$0xff]   ;;  %v2362_v9 = vld [vmem:[#allocation2 + $0x22c] ss:$16 sps:$4 sm:$0xff]  }
  0x2b   :  { %v2359_v8 = vld [vmem:[#allocation2 + $0x224] ss:$16 sps:$4 sm:$0xff]   ;;  %v2357_v10 = vld [vmem:[#allocation2 + $0x220] ss:$16 sps:$4 sm:$0xff]   ;;  %v2360_v11 = vld [vmem:[#allocation2 + $0x228] ss:$16 sps:$4 sm:$0xff]  }
  0x2c   :  { %v2365_v12 = vld [vmem:[#allocation2 + $0x244] ss:$16 sps:$4 sm:$0xff]   ;;  %v2368_v13 = vld [vmem:[#allocation2 + $0x24c] ss:$16 sps:$4 sm:$0xff]   ;;  %v2363_v14 = vld [vmem:[#allocation2 + $0x240] ss:$16 sps:$4 sm:$0xff]  }
  0x2d   :  { %1265 = vmatpush1.bf16.msra.mxu0 %v2295_v26  ;;  %1429 = vmatpush1.bf16.msra.mxu1 %v2296_v27  ;;  %v2366_v15 = vld [vmem:[#allocation2 + $0x248] ss:$16 sps:$4 sm:$0xff]   ;;  %v2371_v16 = vld [vmem:[#allocation2 + $0x264] ss:$16 sps:$4 sm:$0xff]   ;;  %v2374_v17 = vld [vmem:[#allocation2 + $0x26c] ss:$16 sps:$4 sm:$0xff]  }
  0x2e   :  { %1266 = vmatprep.subr.bf16.mxu0 %v2297_v28  ;;  %1430 = vmatprep.subr.bf16.mxu1 %v2299_v29  ;;  %v2369_v18 = vld [vmem:[#allocation2 + $0x260] ss:$16 sps:$4 sm:$0xff]   ;;  %v2372_v19 = vld [vmem:[#allocation2 + $0x268] ss:$16 sps:$4 sm:$0xff]   ;;  %v2377_v20 = vld [vmem:[#allocation2 + $0x284] ss:$16 sps:$4 sm:$0xff]  }
  0x2f   :  { %v2380_v21 = vld [vmem:[#allocation2 + $0x28c] ss:$16 sps:$4 sm:$0xff]   ;;  %v2375_v22 = vld [vmem:[#allocation2 + $0x280] ss:$16 sps:$4 sm:$0xff]   ;;  %v2378_v23 = vld [vmem:[#allocation2 + $0x288] ss:$16 sps:$4 sm:$0xff]  }
  0x30   :  { %v2383_v24 = vld [vmem:[#allocation2 + $0x2a4] ss:$16 sps:$4 sm:$0xff]   ;;  %v2386_v25 = vld [vmem:[#allocation2 + $0x2ac] ss:$16 sps:$4 sm:$0xff]   ;;  %v2381_v26 = vld [vmem:[#allocation2 + $0x2a0] ss:$16 sps:$4 sm:$0xff]  }
  0x31   :  { %1267 = vmatpush1.bf16.msra.mxu0 %v2301_v30  ;;  %1431 = vmatpush1.bf16.msra.mxu1 %v2302_v31  ;;  %v2384_v27 = vld [vmem:[#allocation2 + $0x2a8] ss:$16 sps:$4 sm:$0xff]   ;;  %v2389_v28 = vld [vmem:[#allocation2 + $0x2c4] ss:$16 sps:$4 sm:$0xff]   ;;  %v2392_v29 = vld [vmem:[#allocation2 + $0x2cc] ss:$16 sps:$4 sm:$0xff]  }
  0x32   :  { %1268 = vmatprep.subr.bf16.mxu0 %v2303_v32  ;;  %1432 = vmatprep.subr.bf16.mxu1 %v2305_v33  ;;  %v39_v30 = vld [vmem:[%s2811_s0 + $0x18] sm:$0xff]  ;;  %v2387_v31 = vld [vmem:[#allocation2 + $0x2c0] ss:$16 sps:$4 sm:$0xff]   ;;  %v2413_v46 = vld [vmem:[#allocation2 + $0x344] ss:$16 sps:$4 sm:$0xff]  }
  0x33   :  { %v46_v32 = vpack.c.bf16 %v39_v30, %v39_v30  ;;  %v2390_v33 = vld [vmem:[#allocation2 + $0x2c8] ss:$16 sps:$4 sm:$0xff]   ;;  %v2411_v48 = vld [vmem:[#allocation2 + $0x340] ss:$16 sps:$4 sm:$0xff]   ;;  %v2443_v2 = vld [vmem:[#allocation2 + $0x3e4] ss:$16 sps:$4 sm:$0xff]  }
  0x34   :  { %v2479_v30 = vld [vmem:[#allocation2 + $0x4a4] ss:$16 sps:$4 sm:$0xff]  }
  0x35   :  { %1269 = vmatpush1.bf16.msra.mxu0 %v2307_v34  ;;  %1433 = vmatpush1.bf16.msra.mxu1 %v2308_v35  ;;  %v2395_v34 = vld [vmem:[#allocation2 + $0x2e4] ss:$16 sps:$4 sm:$0xff]   ;;  %v2398_v35 = vld [vmem:[#allocation2 + $0x2ec] ss:$16 sps:$4 sm:$0xff]  }
  0x36   :  { %1270 = vmatprep.subr.bf16.mxu0 %v2309_v36  ;;  %1434 = vmatprep.subr.bf16.mxu1 %v2311_v37  ;;  %v2393_v36 = vld [vmem:[#allocation2 + $0x2e0] ss:$16 sps:$4 sm:$0xff]   ;;  %v2396_v37 = vld [vmem:[#allocation2 + $0x2e8] ss:$16 sps:$4 sm:$0xff]  }
  0x39   :  { %1271 = vmatpush1.bf16.msra.mxu0 %v2313_v38  ;;  %1435 = vmatpush1.bf16.msra.mxu1 %v2314_v39  ;;  %v2401_v38 = vld [vmem:[#allocation2 + $0x304] ss:$16 sps:$4 sm:$0xff]   ;;  %v2404_v39 = vld [vmem:[#allocation2 + $0x30c] ss:$16 sps:$4 sm:$0xff]  }
  0x3a   :  { %1272 = vmatprep.subr.bf16.mxu0 %v2315_v40  ;;  %1436 = vmatprep.subr.bf16.mxu1 %v2317_v41  ;;  %v2399_v40 = vld [vmem:[#allocation2 + $0x300] ss:$16 sps:$4 sm:$0xff]   ;;  %v2402_v41 = vld [vmem:[#allocation2 + $0x308] ss:$16 sps:$4 sm:$0xff]  }
  0x3d   :  { %1273 = vmatpush1.bf16.msra.mxu0 %v2319_v42  ;;  %1437 = vmatpush1.bf16.msra.mxu1 %v2320_v43  ;;  %v2407_v42 = vld [vmem:[#allocation2 + $0x324] ss:$16 sps:$4 sm:$0xff]   ;;  %v2410_v43 = vld [vmem:[#allocation2 + $0x32c] ss:$16 sps:$4 sm:$0xff]  }
  0x3e   :  { %1274 = vmatprep.subr.bf16.mxu0 %v2321_v44  ;;  %1438 = vmatprep.subr.bf16.mxu1 %v2323_v45  ;;  %v2405_v44 = vld [vmem:[#allocation2 + $0x320] ss:$16 sps:$4 sm:$0xff]   ;;  %v2408_v45 = vld [vmem:[#allocation2 + $0x328] ss:$16 sps:$4 sm:$0xff]  }
  0x41   :  { %1275 = vmatpush1.bf16.msra.mxu0 %v2325_v47  ;;  %1439 = vmatpush1.bf16.msra.mxu1 %v2326_v49  ;;  %v2416_v47 = vld [vmem:[#allocation2 + $0x34c] ss:$16 sps:$4 sm:$0xff]   ;;  %v2414_v49 = vld [vmem:[#allocation2 + $0x348] ss:$16 sps:$4 sm:$0xff]  }
  0x42   :  { %1276 = vmatprep.subr.bf16.mxu0 %v2327_v50  ;;  %1440 = vmatprep.subr.bf16.mxu1 %v2329_v51  ;;  %v2419_v50 = vld [vmem:[#allocation2 + $0x364] ss:$16 sps:$4 sm:$0xff]   ;;  %v2422_v51 = vld [vmem:[#allocation2 + $0x36c] ss:$16 sps:$4 sm:$0xff]  }
  0x45   :  { %1277 = vmatpush1.bf16.msra.mxu0 %v2331_v52  ;;  %1441 = vmatpush1.bf16.msra.mxu1 %v2332_v53  ;;  %v2417_v52 = vld [vmem:[#allocation2 + $0x360] ss:$16 sps:$4 sm:$0xff]   ;;  %v2420_v53 = vld [vmem:[#allocation2 + $0x368] ss:$16 sps:$4 sm:$0xff]  }
  0x46   :  { %1278 = vmatprep.subr.bf16.mxu0 %v2333_v54  ;;  %1442 = vmatprep.subr.bf16.mxu1 %v2335_v55  ;;  %v2425_v54 = vld [vmem:[#allocation2 + $0x384] ss:$16 sps:$4 sm:$0xff]   ;;  %v2428_v55 = vld [vmem:[#allocation2 + $0x38c] ss:$16 sps:$4 sm:$0xff]  }
  0x49   :  { %1279 = vmatpush1.bf16.msra.mxu0 %v2337_v56  ;;  %1443 = vmatpush1.bf16.msra.mxu1 %v2338_v57  ;;  %v2423_v56 = vld [vmem:[#allocation2 + $0x380] ss:$16 sps:$4 sm:$0xff]   ;;  %v2426_v57 = vld [vmem:[#allocation2 + $0x388] ss:$16 sps:$4 sm:$0xff]  }
  0x4a   :  { %1280 = vmatprep.subr.bf16.mxu0 %v2339_v58  ;;  %1444 = vmatprep.subr.bf16.mxu1 %v2341_v59  ;;  %v2431_v58 = vld [vmem:[#allocation2 + $0x3a4] ss:$16 sps:$4 sm:$0xff]   ;;  %v2434_v59 = vld [vmem:[#allocation2 + $0x3ac] ss:$16 sps:$4 sm:$0xff]  }
  0x4d   :  { %1281 = vmatpush1.bf16.msra.mxu0 %v2343_v60  ;;  %1445 = vmatpush1.bf16.msra.mxu1 %v2344_v61  ;;  %v2429_v60 = vld [vmem:[#allocation2 + $0x3a0] ss:$16 sps:$4 sm:$0xff]   ;;  %v2432_v61 = vld [vmem:[#allocation2 + $0x3a8] ss:$16 sps:$4 sm:$0xff]  }
  0x4e   :  { %1282 = vmatprep.subr.bf16.mxu0 %v2345_v62  ;;  %1446 = vmatprep.subr.bf16.mxu1 %v2347_v63  ;;  %v2437_v62 = vld [vmem:[#allocation2 + $0x3c4] ss:$16 sps:$4 sm:$0xff]   ;;  %v2440_v63 = vld [vmem:[#allocation2 + $0x3cc] ss:$16 sps:$4 sm:$0xff]  }
  0x51   :  { %1283 = vmatpush1.bf16.msra.mxu0 %v2349_v0  ;;  %1447 = vmatpush1.bf16.msra.mxu1 %v2350_v1  ;;  %v2435_v0 = vld [vmem:[#allocation2 + $0x3c0] ss:$16 sps:$4 sm:$0xff]   ;;  %v2438_v1 = vld [vmem:[#allocation2 + $0x3c8] ss:$16 sps:$4 sm:$0xff]  }
  0x52   :  { %1293 = vmatprep.subr.bf16.mxu0 %v2353_v3  ;;  %1457 = vmatprep.subr.bf16.mxu1 %v2356_v4  ;;  %v2446_v3 = vld [vmem:[#allocation2 + $0x3ec] ss:$16 sps:$4 sm:$0xff]   ;;  %v2441_v4 = vld [vmem:[#allocation2 + $0x3e0] ss:$16 sps:$4 sm:$0xff]  }
  0x54   :  { %1285 = vmatmul.mubr.bf16.vlgmr.msra.gmra.mrb[0].mxu0 %v43_v5  ;;  %1449 = vmatmul.mubr.bf16.vlgmr.msra.gmra.mrb[0].mxu1 %v43_v5  ;;  %v2444_v5 = vld [vmem:[#allocation2 + $0x3e8] ss:$16 sps:$4 sm:$0xff]  }
  0x55   :  { %1294 = vmatpush1.bf16.msra.mxu0 %v2351_v6  ;;  %1458 = vmatpush1.bf16.msra.mxu1 %v2354_v7  ;;  %v2449_v6 = vld [vmem:[#allocation2 + $0x404] ss:$16 sps:$4 sm:$0xff]  }
  0x56   :  { %1295 = vmatprep.subr.bf16.mxu0 %v2359_v8  ;;  %1459 = vmatprep.subr.bf16.mxu1 %v2362_v9  ;;  %v38_v7 = vld [vmem:[%s2811_s0 + $0x10] sm:$0xff]  ;;  %v2452_v8 = vld [vmem:[#allocation2 + $0x40c] ss:$16 sps:$4 sm:$0xff]  }
  0x57   :  { %1325 = vmatprep.mubr.bf16.mxu0 %v46_v32  ;;  %1489 = vmatprep.mubr.bf16.mxu1 %v46_v32  ;;  %v2447_v9 = vld [vmem:[#allocation2 + $0x400] ss:$16 sps:$4 sm:$0xff]  }
  0x58   :  { %v2477_v32 = vld [vmem:[#allocation2 + $0x4a0] ss:$16 sps:$4 sm:$0xff]  }
  0x59   :  { %1296 = vmatpush1.bf16.msra.mxu0 %v2357_v10  ;;  %1460 = vmatpush1.bf16.msra.mxu1 %v2360_v11  ;;  %v45_v10 = vpack.c.bf16 %v38_v7, %v38_v7  ;;  %v2450_v11 = vld [vmem:[#allocation2 + $0x408] ss:$16 sps:$4 sm:$0xff]   ;;  %v2542_v7 = vld [vmem:[#allocation2 + $0x5ec] ss:$16 sps:$4 sm:$0xff]  }
  0x5a   :  { %1297 = vmatprep.subr.bf16.mxu0 %v2365_v12  ;;  %1461 = vmatprep.subr.bf16.mxu1 %v2368_v13  ;;  %v2455_v12 = vld [vmem:[#allocation2 + $0x424] ss:$16 sps:$4 sm:$0xff]   ;;  %v2458_v13 = vld [vmem:[#allocation2 + $0x42c] ss:$16 sps:$4 sm:$0xff]  }
  0x5d   :  { %1298 = vmatpush1.bf16.msra.mxu0 %v2363_v14  ;;  %1462 = vmatpush1.bf16.msra.mxu1 %v2366_v15  ;;  %v41_v14 = vld [vmem:[%s2811_s0 + $0x28] sm:$0xff] }
  0x5e   :  { %1299 = vmatprep.subr.bf16.mxu0 %v2371_v16  ;;  %1463 = vmatprep.subr.bf16.mxu1 %v2374_v17  ;;  %v48_v15 = vpack.c.bf16 %v41_v14, %v41_v14  ;;  %v2453_v16 = vld [vmem:[#allocation2 + $0x420] ss:$16 sps:$4 sm:$0xff]   ;;  %v2456_v17 = vld [vmem:[#allocation2 + $0x428] ss:$16 sps:$4 sm:$0xff]  }
  0x5f   :  { %v2543_v14 = vld [vmem:[#allocation2 + $0x600] ss:$16 sps:$4 sm:$0xff]  }
  0x61   :  { %1300 = vmatpush1.bf16.msra.mxu0 %v2369_v18  ;;  %1464 = vmatpush1.bf16.msra.mxu1 %v2372_v19  ;;  %v2461_v18 = vld [vmem:[#allocation2 + $0x444] ss:$16 sps:$4 sm:$0xff]   ;;  %v2464_v19 = vld [vmem:[#allocation2 + $0x44c] ss:$16 sps:$4 sm:$0xff]  }
  0x62   :  { %1301 = vmatprep.subr.bf16.mxu0 %v2377_v20  ;;  %1465 = vmatprep.subr.bf16.mxu1 %v2380_v21  ;;  %v2459_v20 = vld [vmem:[#allocation2 + $0x440] ss:$16 sps:$4 sm:$0xff]   ;;  %v2462_v21 = vld [vmem:[#allocation2 + $0x448] ss:$16 sps:$4 sm:$0xff]  }
  0x65   :  { %1302 = vmatpush1.bf16.msra.mxu0 %v2375_v22  ;;  %1466 = vmatpush1.bf16.msra.mxu1 %v2378_v23  ;;  %v2467_v22 = vld [vmem:[#allocation2 + $0x464] ss:$16 sps:$4 sm:$0xff]   ;;  %v2470_v23 = vld [vmem:[#allocation2 + $0x46c] ss:$16 sps:$4 sm:$0xff]  }
  0x66   :  { %1303 = vmatprep.subr.bf16.mxu0 %v2383_v24  ;;  %1467 = vmatprep.subr.bf16.mxu1 %v2386_v25  ;;  %v2465_v24 = vld [vmem:[#allocation2 + $0x460] ss:$16 sps:$4 sm:$0xff]   ;;  %v2468_v25 = vld [vmem:[#allocation2 + $0x468] ss:$16 sps:$4 sm:$0xff]  }
  0x69   :  { %1304 = vmatpush1.bf16.msra.mxu0 %v2381_v26  ;;  %1468 = vmatpush1.bf16.msra.mxu1 %v2384_v27  ;;  %v2473_v26 = vld [vmem:[#allocation2 + $0x484] ss:$16 sps:$4 sm:$0xff]   ;;  %v2476_v27 = vld [vmem:[#allocation2 + $0x48c] ss:$16 sps:$4 sm:$0xff]  }
  0x6a   :  { %1305 = vmatprep.subr.bf16.mxu0 %v2389_v28  ;;  %1469 = vmatprep.subr.bf16.mxu1 %v2392_v29  ;;  %v2471_v28 = vld [vmem:[#allocation2 + $0x480] ss:$16 sps:$4 sm:$0xff]   ;;  %v2474_v29 = vld [vmem:[#allocation2 + $0x488] ss:$16 sps:$4 sm:$0xff]  }
  0x6d   :  { %1306 = vmatpush1.bf16.msra.mxu0 %v2387_v31  ;;  %1470 = vmatpush1.bf16.msra.mxu1 %v2390_v33  ;;  %v2482_v31 = vld [vmem:[#allocation2 + $0x4ac] ss:$16 sps:$4 sm:$0xff]   ;;  %v2480_v33 = vld [vmem:[#allocation2 + $0x4a8] ss:$16 sps:$4 sm:$0xff]  }
  0x6e   :  { %1307 = vmatprep.subr.bf16.mxu0 %v2395_v34  ;;  %1471 = vmatprep.subr.bf16.mxu1 %v2398_v35  ;;  %v2485_v34 = vld [vmem:[#allocation2 + $0x4c4] ss:$16 sps:$4 sm:$0xff]   ;;  %v2488_v35 = vld [vmem:[#allocation2 + $0x4cc] ss:$16 sps:$4 sm:$0xff]  }
  0x71   :  { %1308 = vmatpush1.bf16.msra.mxu0 %v2393_v36  ;;  %1472 = vmatpush1.bf16.msra.mxu1 %v2396_v37  ;;  %v2483_v36 = vld [vmem:[#allocation2 + $0x4c0] ss:$16 sps:$4 sm:$0xff]   ;;  %v2486_v37 = vld [vmem:[#allocation2 + $0x4c8] ss:$16 sps:$4 sm:$0xff]  }
  0x72   :  { %1309 = vmatprep.subr.bf16.mxu0 %v2401_v38  ;;  %1473 = vmatprep.subr.bf16.mxu1 %v2404_v39  ;;  %v2491_v38 = vld [vmem:[#allocation2 + $0x4e4] ss:$16 sps:$4 sm:$0xff]   ;;  %v2494_v39 = vld [vmem:[#allocation2 + $0x4ec] ss:$16 sps:$4 sm:$0xff]  }
  0x75   :  { %1310 = vmatpush1.bf16.msra.mxu0 %v2399_v40  ;;  %1474 = vmatpush1.bf16.msra.mxu1 %v2402_v41  ;;  %v2489_v40 = vld [vmem:[#allocation2 + $0x4e0] ss:$16 sps:$4 sm:$0xff]   ;;  %v2492_v41 = vld [vmem:[#allocation2 + $0x4e8] ss:$16 sps:$4 sm:$0xff]  }
  0x76   :  { %1311 = vmatprep.subr.bf16.mxu0 %v2407_v42  ;;  %1475 = vmatprep.subr.bf16.mxu1 %v2410_v43  ;;  %v2497_v42 = vld [vmem:[#allocation2 + $0x504] ss:$16 sps:$4 sm:$0xff]   ;;  %v2500_v43 = vld [vmem:[#allocation2 + $0x50c] ss:$16 sps:$4 sm:$0xff]  }
  0x79   :  { %1312 = vmatpush1.bf16.msra.mxu0 %v2405_v44  ;;  %1476 = vmatpush1.bf16.msra.mxu1 %v2408_v45  ;;  %v2495_v44 = vld [vmem:[#allocation2 + $0x500] ss:$16 sps:$4 sm:$0xff]   ;;  %v2498_v45 = vld [vmem:[#allocation2 + $0x508] ss:$16 sps:$4 sm:$0xff]  }
  0x7a   :  { %1313 = vmatprep.subr.bf16.mxu0 %v2413_v46  ;;  %1477 = vmatprep.subr.bf16.mxu1 %v2416_v47  ;;  %v2503_v46 = vld [vmem:[#allocation2 + $0x524] ss:$16 sps:$4 sm:$0xff]   ;;  %v2506_v47 = vld [vmem:[#allocation2 + $0x52c] ss:$16 sps:$4 sm:$0xff]  }
  0x7d   :  { %1314 = vmatpush1.bf16.msra.mxu0 %v2411_v48  ;;  %1478 = vmatpush1.bf16.msra.mxu1 %v2414_v49  ;;  %v2501_v48 = vld [vmem:[#allocation2 + $0x520] ss:$16 sps:$4 sm:$0xff]   ;;  %v2504_v49 = vld [vmem:[#allocation2 + $0x528] ss:$16 sps:$4 sm:$0xff]  }
  0x7e   :  { %1315 = vmatprep.subr.bf16.mxu0 %v2419_v50  ;;  %1479 = vmatprep.subr.bf16.mxu1 %v2422_v51  ;;  %v2509_v50 = vld [vmem:[#allocation2 + $0x544] ss:$16 sps:$4 sm:$0xff]   ;;  %v2512_v51 = vld [vmem:[#allocation2 + $0x54c] ss:$16 sps:$4 sm:$0xff]  }
  0x81   :  { %1316 = vmatpush1.bf16.msra.mxu0 %v2417_v52  ;;  %1480 = vmatpush1.bf16.msra.mxu1 %v2420_v53  ;;  %v2507_v52 = vld [vmem:[#allocation2 + $0x540] ss:$16 sps:$4 sm:$0xff]   ;;  %v2510_v53 = vld [vmem:[#allocation2 + $0x548] ss:$16 sps:$4 sm:$0xff]  }
  0x82   :  { %1317 = vmatprep.subr.bf16.mxu0 %v2425_v54  ;;  %1481 = vmatprep.subr.bf16.mxu1 %v2428_v55  ;;  %v2515_v54 = vld [vmem:[#allocation2 + $0x564] ss:$16 sps:$4 sm:$0xff]   ;;  %v2518_v55 = vld [vmem:[#allocation2 + $0x56c] ss:$16 sps:$4 sm:$0xff]  }
  0x85   :  { %1318 = vmatpush1.bf16.msra.mxu0 %v2423_v56  ;;  %1482 = vmatpush1.bf16.msra.mxu1 %v2426_v57  ;;  %v2513_v56 = vld [vmem:[#allocation2 + $0x560] ss:$16 sps:$4 sm:$0xff]   ;;  %v2516_v57 = vld [vmem:[#allocation2 + $0x568] ss:$16 sps:$4 sm:$0xff]  }
  0x86   :  { %1319 = vmatprep.subr.bf16.mxu0 %v2431_v58  ;;  %1483 = vmatprep.subr.bf16.mxu1 %v2434_v59  ;;  %v2521_v58 = vld [vmem:[#allocation2 + $0x584] ss:$16 sps:$4 sm:$0xff]   ;;  %v2524_v59 = vld [vmem:[#allocation2 + $0x58c] ss:$16 sps:$4 sm:$0xff]  }
  0x89   :  { %1320 = vmatpush1.bf16.msra.mxu0 %v2429_v60  ;;  %1484 = vmatpush1.bf16.msra.mxu1 %v2432_v61  ;;  %v2519_v60 = vld [vmem:[#allocation2 + $0x580] ss:$16 sps:$4 sm:$0xff]   ;;  %v2522_v61 = vld [vmem:[#allocation2 + $0x588] ss:$16 sps:$4 sm:$0xff]  }
  0x8a   :  { %1321 = vmatprep.subr.bf16.mxu0 %v2437_v62  ;;  %1485 = vmatprep.subr.bf16.mxu1 %v2440_v63  ;;  %v2527_v62 = vld [vmem:[#allocation2 + $0x5a4] ss:$16 sps:$4 sm:$0xff]   ;;  %v2530_v63 = vld [vmem:[#allocation2 + $0x5ac] ss:$16 sps:$4 sm:$0xff]  }
  0x8d   :  { %1322 = vmatpush1.bf16.msra.mxu0 %v2435_v0  ;;  %1486 = vmatpush1.bf16.msra.mxu1 %v2438_v1  ;;  %v2525_v0 = vld [vmem:[#allocation2 + $0x5a0] ss:$16 sps:$4 sm:$0xff]   ;;  %v2528_v1 = vld [vmem:[#allocation2 + $0x5a8] ss:$16 sps:$4 sm:$0xff]  }
  0x8e   :  { %1323 = vmatprep.subr.bf16.mxu0 %v2443_v2  ;;  %1487 = vmatprep.subr.bf16.mxu1 %v2446_v3  ;;  %v2533_v2 = vld [vmem:[#allocation2 + $0x5c4] ss:$16 sps:$4 sm:$0xff]   ;;  %v2536_v3 = vld [vmem:[#allocation2 + $0x5cc] ss:$16 sps:$4 sm:$0xff]  }
  0x91   :  { %1324 = vmatpush1.bf16.msra.mxu0 %v2441_v4  ;;  %1488 = vmatpush1.bf16.msra.mxu1 %v2444_v5  ;;  %v2531_v4 = vld [vmem:[#allocation2 + $0x5c0] ss:$16 sps:$4 sm:$0xff]   ;;  %v2534_v5 = vld [vmem:[#allocation2 + $0x5c8] ss:$16 sps:$4 sm:$0xff]  }
  0x92   :  { %1334 = vmatprep.subr.bf16.mxu0 %v2449_v6  ;;  %1498 = vmatprep.subr.bf16.mxu1 %v2452_v8  ;;  %v2539_v6 = vld [vmem:[#allocation2 + $0x5e4] ss:$16 sps:$4 sm:$0xff]   ;;  %v2537_v8 = vld [vmem:[#allocation2 + $0x5e0] ss:$16 sps:$4 sm:$0xff]  }
  0x94   :  { %1326 = vmatmul.mubr.bf16.vlgmr.msra.gmra.mrb[0].mxu0 %v45_v10  ;;  %1490 = vmatmul.mubr.bf16.vlgmr.msra.gmra.mrb[0].mxu1 %v45_v10  ;;  %v40_v10 = vld [vmem:[%s2811_s0 + $0x20] sm:$0xff] }
  0x95   :  { %1335 = vmatpush1.bf16.msra.mxu0 %v2447_v9  ;;  %1499 = vmatpush1.bf16.msra.mxu1 %v2450_v11  ;;  %v2540_v9 = vld [vmem:[#allocation2 + $0x5e8] ss:$16 sps:$4 sm:$0xff]   ;;  %v2545_v11 = vld [vmem:[#allocation2 + $0x604] ss:$16 sps:$4 sm:$0xff]  }
  0x96   :  { %1336 = vmatprep.subr.bf16.mxu0 %v2455_v12  ;;  %1500 = vmatprep.subr.bf16.mxu1 %v2458_v13  ;;  %v2548_v12 = vld [vmem:[#allocation2 + $0x60c] ss:$16 sps:$4 sm:$0xff]   ;;  %v47_v13 = vpack.c.bf16 %v40_v10, %v40_v10 }
  0x97   :  { %1366 = vmatprep.mubr.bf16.mxu0 %v48_v15  ;;  %1530 = vmatprep.mubr.bf16.mxu1 %v48_v15  ;;  %v2546_v15 = vld [vmem:[#allocation2 + $0x608] ss:$16 sps:$4 sm:$0xff]  }
  0x99   :  { %1337 = vmatpush1.bf16.msra.mxu0 %v2453_v16  ;;  %1501 = vmatpush1.bf16.msra.mxu1 %v2456_v17  ;;  %v2549_v16 = vld [vmem:[%s2814_s3 + $0x40] sm:$0xff]  }
  0x9a   :  { %1338 = vmatprep.subr.bf16.mxu0 %v2461_v18  ;;  %1502 = vmatprep.subr.bf16.mxu1 %v2464_v19  ;;  %v2550_v17 = vld [vmem:[%s2814_s3 + $0xc0] sm:$0xff]   ;;  %v2632_v18 = vmov 0   ;;  %v42_v19 = vld [vmem:[%s2811_s0 + $0x30] sm:$0xff]  ;;  %s2633_s0 = smov [#allocation5]  }
  0x9b   :  { %s1938_s1 = sshll.u32 %s2633_s0, 4  ;;  %s1939_s1 = int_to_ptr.vmem [resolvable:$true] %s1938_s1 }
  0x9c   :  { %s2603_s7 = scalar_lea.vmem %s1939_s1, 128  ;;  %p2608_p9 = scmp.lt.s32.totalorder %s1939_s1, %s1939_s1 }
  0x9d   :  { %1339 = vmatpush1.bf16.msra.mxu0 %v2459_v20  ;;  %1503 = vmatpush1.bf16.msra.mxu1 %v2462_v21  ;;  %v49_v20 = vpack.c.bf16 %v42_v19, %v42_v19  ;;  %v2551_v21 = vld [vmem:[%s2814_s3] sm:$0xff]   ;;  %p2604_p8 = scmp.ne.s32.totalorder %s1939_s1, %s2603_s7  ;;  %p2609_p10 = scmp.lt.s32.totalorder %s2603_s7, %s2603_s7 }
  0x9e   :  { %1340 = vmatprep.subr.bf16.mxu0 %v2467_v22  ;;  %1504 = vmatprep.subr.bf16.mxu1 %v2470_v23  ;;  %v2552_v22 = vld [vmem:[%s2814_s3 + $0x80] sm:$0xff]   ;;  %v2553_v23 = vld [vmem:[%s2814_s3 + $0x48] sm:$0xff]  }
  0x9f   :  { %p2610_p11 = por %p2609_p10, %p2608_p9 }
  0xa1   :  { %1341 = vmatpush1.bf16.msra.mxu0 %v2465_v24  ;;  %1505 = vmatpush1.bf16.msra.mxu1 %v2468_v25  ;;  %v2554_v24 = vld [vmem:[%s2814_s3 + $0xc8] sm:$0xff]   ;;  %p2611_p12 = pnand %p2610_p11, %p2604_p8 }
  0xa2   :  { %1342 = vmatprep.subr.bf16.mxu0 %v2473_v26  ;;  %1506 = vmatprep.subr.bf16.mxu1 %v2476_v27  ;;  %v2555_v25 = vld [vmem:[%s2814_s3 + $0x8] sm:$0xff]   ;;  %v2557_v27 = vld [vmem:[%s2814_s3 + $0x50] sm:$0xff]  }
  0xa3   :  { %v2556_v26 = vld [vmem:[%s2814_s3 + $0x88] sm:$0xff]  }
  0xa5   :  { %1343 = vmatpush1.bf16.msra.mxu0 %v2471_v28  ;;  %1507 = vmatpush1.bf16.msra.mxu1 %v2474_v29  ;;  %v2558_v28 = vld [vmem:[%s2814_s3 + $0xd0] sm:$0xff]  }
  0xa6   :  { %1344 = vmatprep.subr.bf16.mxu0 %v2479_v30  ;;  %1508 = vmatprep.subr.bf16.mxu1 %v2482_v31  ;;  %v2559_v29 = vld [vmem:[%s2814_s3 + $0x10] sm:$0xff]   ;;  %v2561_v31 = vld [vmem:[%s2814_s3 + $0x58] sm:$0xff]  }
  0xa7   :  { %v2560_v30 = vld [vmem:[%s2814_s3 + $0x90] sm:$0xff]  }
  0xa9   :  { %1345 = vmatpush1.bf16.msra.mxu0 %v2477_v32  ;;  %1509 = vmatpush1.bf16.msra.mxu1 %v2480_v33  ;;  %v2562_v32 = vld [vmem:[%s2814_s3 + $0xd8] sm:$0xff]  }
  0xaa   :  { %1346 = vmatprep.subr.bf16.mxu0 %v2485_v34  ;;  %1510 = vmatprep.subr.bf16.mxu1 %v2488_v35  ;;  %v2563_v33 = vld [vmem:[%s2814_s3 + $0x18] sm:$0xff]   ;;  %v2565_v35 = vld [vmem:[%s2814_s3 + $0x60] sm:$0xff]  }
  0xab   :  { %v2564_v34 = vld [vmem:[%s2814_s3 + $0x98] sm:$0xff]  }
  0xad   :  { %1347 = vmatpush1.bf16.msra.mxu0 %v2483_v36  ;;  %1511 = vmatpush1.bf16.msra.mxu1 %v2486_v37  ;;  %v2566_v36 = vld [vmem:[%s2814_s3 + $0xe0] sm:$0xff]  }
  0xae   :  { %1348 = vmatprep.subr.bf16.mxu0 %v2491_v38  ;;  %1512 = vmatprep.subr.bf16.mxu1 %v2494_v39  ;;  %v2567_v37 = vld [vmem:[%s2814_s3 + $0x20] sm:$0xff]   ;;  %v2569_v39 = vld [vmem:[%s2814_s3 + $0x68] sm:$0xff]  }
  0xaf   :  { %v2568_v38 = vld [vmem:[%s2814_s3 + $0xa0] sm:$0xff]  }
  0xb1   :  { %1349 = vmatpush1.bf16.msra.mxu0 %v2489_v40  ;;  %1513 = vmatpush1.bf16.msra.mxu1 %v2492_v41  ;;  %v2570_v40 = vld [vmem:[%s2814_s3 + $0xe8] sm:$0xff]  }
  0xb2   :  { %1350 = vmatprep.subr.bf16.mxu0 %v2497_v42  ;;  %1514 = vmatprep.subr.bf16.mxu1 %v2500_v43  ;;  %v2571_v41 = vld [vmem:[%s2814_s3 + $0x28] sm:$0xff]   ;;  %v2573_v43 = vld [vmem:[%s2814_s3 + $0x70] sm:$0xff]  }
  0xb3   :  { %v2572_v42 = vld [vmem:[%s2814_s3 + $0xa8] sm:$0xff]  }
  0xb5   :  { %1351 = vmatpush1.bf16.msra.mxu0 %v2495_v44  ;;  %1515 = vmatpush1.bf16.msra.mxu1 %v2498_v45  ;;  %v2574_v44 = vld [vmem:[%s2814_s3 + $0xf0] sm:$0xff]  }
  0xb6   :  { %1352 = vmatprep.subr.bf16.mxu0 %v2503_v46  ;;  %1516 = vmatprep.subr.bf16.mxu1 %v2506_v47  ;;  %v2575_v45 = vld [vmem:[%s2814_s3 + $0x30] sm:$0xff]   ;;  %v2577_v47 = vld [vmem:[%s2814_s3 + $0x78] sm:$0xff]  }
  0xb7   :  { %v2576_v46 = vld [vmem:[%s2814_s3 + $0xb0] sm:$0xff]  }
  0xb9   :  { %1353 = vmatpush1.bf16.msra.mxu0 %v2501_v48  ;;  %1517 = vmatpush1.bf16.msra.mxu1 %v2504_v49  ;;  %v2578_v48 = vld [vmem:[%s2814_s3 + $0xf8] sm:$0xff]  }
  0xba   :  { %1354 = vmatprep.subr.bf16.mxu0 %v2509_v50  ;;  %1518 = vmatprep.subr.bf16.mxu1 %v2512_v51  ;;  %v2579_v49 = vld [vmem:[%s2814_s3 + $0x38] sm:$0xff]   ;;  %v248_v51 = vlaneseq }
  0xbb   :  { %v2580_v50 = vld [vmem:[%s2814_s3 + $0xb8] sm:$0xff]  }
  0xbd   :  { %1355 = vmatpush1.bf16.msra.mxu0 %v2507_v52  ;;  %1519 = vmatpush1.bf16.msra.mxu1 %v2510_v53  ;;  %v249_v52 = vshrl.u32 %v248_v51, 7 }
  0xbe   :  { %1356 = vmatprep.subr.bf16.mxu0 %v2515_v54  ;;  %1520 = vmatprep.subr.bf16.mxu1 %v2518_v55  ;;  %v246_v55 = vld [vmem:[%s2813_s2] sm:$0xf] }
  0xbf   :  { %v250_v53 = vsub.s32 0, %v249_v52  ;;  %v258_v54 = vsub.s32 2, %v249_v52 }
  0xc1   :  { %1357 = vmatpush1.bf16.msra.mxu0 %v2513_v56  ;;  %1521 = vmatpush1.bf16.msra.mxu1 %v2516_v57  ;;  %v254_v56 = vsub.s32 1, %v249_v52  ;;  %v262_v57 = vsub.s32 3, %v249_v52 }
  0xc2   :  { %1358 = vmatprep.subr.bf16.mxu0 %v2521_v58  ;;  %1522 = vmatprep.subr.bf16.mxu1 %v2524_v59  ;;  %v251_v58 = vrot.slane %v246_v55, %v250_v53  ;;  %v259_v59 = vrot.slane %v246_v55, %v258_v54 }
  0xc5   :  { %1359 = vmatpush1.bf16.msra.mxu0 %v2519_v60  ;;  %1523 = vmatpush1.bf16.msra.mxu1 %v2522_v61  ;;  %v255_v60 = vrot.slane %v246_v55, %v254_v56  ;;  %v263_v61 = vrot.slane %v246_v55, %v262_v57 }
  0xc6   :  { %1360 = vmatprep.subr.bf16.mxu0 %v2527_v62  ;;  %1524 = vmatprep.subr.bf16.mxu1 %v2530_v63 }
  0xc9   :  { %1361 = vmatpush1.bf16.msra.mxu0 %v2525_v0  ;;  %1525 = vmatpush1.bf16.msra.mxu1 %v2528_v1 }
  0xca   :  { %1362 = vmatprep.subr.bf16.mxu0 %v2533_v2  ;;  %1526 = vmatprep.subr.bf16.mxu1 %v2536_v3 }
  0xcd   :  { %1363 = vmatpush1.bf16.msra.mxu0 %v2531_v4  ;;  %1527 = vmatpush1.bf16.msra.mxu1 %v2534_v5 }
  0xce   :  { %1364 = vmatprep.subr.bf16.mxu0 %v2539_v6  ;;  %1528 = vmatprep.subr.bf16.mxu1 %v2542_v7 }
  0xd1   :  { %1365 = vmatpush1.bf16.msra.mxu0 %v2537_v8  ;;  %1529 = vmatpush1.bf16.msra.mxu1 %v2540_v9 }
  0xd2   :  { %1375 = vmatprep.subr.bf16.mxu0 %v2545_v11  ;;  %1539 = vmatprep.subr.bf16.mxu1 %v2548_v12 }
  0xd4   :  { %1367 = vmatmul.mubr.bf16.vlgmr.msra.gmra.mrb[0].mxu0 %v47_v13  ;;  %1531 = vmatmul.mubr.bf16.vlgmr.msra.gmra.mrb[0].mxu1 %v47_v13 }
  0xd5   :  { %1376 = vmatpush1.bf16.msra.mxu0 %v2543_v14  ;;  %1540 = vmatpush1.bf16.msra.mxu1 %v2546_v15 }
  0xd6   :  { %1407 = vmatprep.mubr.bf16.mxu0 %v2632_v18  ;;  %1571 = vmatprep.mubr.bf16.mxu1 %v2632_v18 }
  0xd7   :  { %2178 = vmatprep.subr.bf16.mxu0 %v2549_v16  ;;  %2200 = vmatprep.subr.bf16.mxu1 %v2550_v17 }
  0xe0   :  { %2143 = vmatmul.mubr.msk.bf16.vlgmr.msra.gmra.mrb[0].mxu0 %vm1248_vm0, %v49_v20  ;;  %2144 = vmatmul.mubr.msk.bf16.vlgmr.msra.gmra.mrb[0].mxu1 %vm1248_vm0, %v49_v20  ;;  %v2145_v20 = vld [vmem:[%s2815_s4] ss:$0 sm:$0xff] }
  0xe1   :  { %2179 = vmatpush3.bf16.msra.mxu0 %v2551_v21  ;;  %2201 = vmatpush3.bf16.msra.mxu1 %v2552_v22 }
  0xe2   :  { %2180 = vmatprep.subr.bf16.mxu0 %v2553_v23  ;;  %2202 = vmatprep.subr.bf16.mxu1 %v2554_v24 }
  0xe5   :  { %2181 = vmatpush3.bf16.msra.mxu0 %v2555_v25  ;;  %2203 = vmatpush3.bf16.msra.mxu1 %v2556_v26 }
  0xe6   :  { %2182 = vmatprep.subr.bf16.mxu0 %v2557_v27  ;;  %2204 = vmatprep.subr.bf16.mxu1 %v2558_v28 }
  0xe9   :  { %2183 = vmatpush3.bf16.msra.mxu0 %v2559_v29  ;;  %2205 = vmatpush3.bf16.msra.mxu1 %v2560_v30 }
  0xea   :  { %2184 = vmatprep.subr.bf16.mxu0 %v2561_v31  ;;  %2206 = vmatprep.subr.bf16.mxu1 %v2562_v32 }
  0xed   :  { %2185 = vmatpush3.bf16.msra.mxu0 %v2563_v33  ;;  %2207 = vmatpush3.bf16.msra.mxu1 %v2564_v34 }
  0xee   :  { %2186 = vmatprep.subr.bf16.mxu0 %v2565_v35  ;;  %2208 = vmatprep.subr.bf16.mxu1 %v2566_v36 }
  0xf1   :  { %2187 = vmatpush3.bf16.msra.mxu0 %v2567_v37  ;;  %2209 = vmatpush3.bf16.msra.mxu1 %v2568_v38 }
  0xf2   :  { %2188 = vmatprep.subr.bf16.mxu0 %v2569_v39  ;;  %2210 = vmatprep.subr.bf16.mxu1 %v2570_v40 }
  0xf5   :  { %2189 = vmatpush3.bf16.msra.mxu0 %v2571_v41  ;;  %2211 = vmatpush3.bf16.msra.mxu1 %v2572_v42 }
  0xf6   :  { %2190 = vmatprep.subr.bf16.mxu0 %v2573_v43  ;;  %2212 = vmatprep.subr.bf16.mxu1 %v2574_v44 }
  0xf9   :  { %2191 = vmatpush3.bf16.msra.mxu0 %v2575_v45  ;;  %2213 = vmatpush3.bf16.msra.mxu1 %v2576_v46 }
  0xfa   :  { %2192 = vmatprep.subr.bf16.mxu0 %v2577_v47  ;;  %2214 = vmatprep.subr.bf16.mxu1 %v2578_v48 }
  0xfd   :  { %2193 = vmatpush3.bf16.msra.mxu0 %v2579_v49  ;;  %2215 = vmatpush3.bf16.msra.mxu1 %v2580_v50 }
 0x1b3   :  { %v1409_v62 = vpop.f32.mrb[0].mxu0  ;;  %v1573_v63 = vpop.f32.mrb[0].mxu1 }
 0x1b4   :  { %v2222_v0 = vadd.f32 %v1409_v62, %v251_v58  ;;  %v2224_v1 = vadd.f32 %v1573_v63, %v259_v59  ;;  %v1411_v2 = vpop.f32.mrb[1].mxu0  ;;  %v1575_v3 = vpop.f32.mrb[1].mxu1 }
 0x1b5   :  { %v2223_v4 = vadd.f32 %v1411_v2, %v255_v60  ;;  %v2225_v5 = vadd.f32 %v1575_v3, %v263_v61  ;;  %v1413_v6 = vpop.f32.mrb[2].mxu0  ;;  %v1577_v7 = vpop.f32.mrb[2].mxu1 }
 0x1b6   :  { %v1580_v8 = vmax.f32 %v2222_v0, 0.0  ;;  %v1582_v9 = vmax.f32 %v2224_v1, 0.0  ;;  %v1414_v10 = vpop.f32.mrb[3].mxu0  ;;  %v1578_v11 = vpop.f32.mrb[3].mxu1 }
 0x1b7   :  { %v1581_v12 = vmax.f32 %v2223_v4, 0.0  ;;  %v1583_v13 = vmax.f32 %v2225_v5, 0.0 }
 0x1b8   :  { %v1584_v16 = vpack.c.bf16 %v1580_v8, %v1580_v8  ;;  %v1586_v17 = vpack.c.bf16 %v1582_v9, %v1582_v9 }
 0x1b9   :  { %v1585_v14 = vpack.c.bf16 %v1581_v12, %v1581_v12  ;;  %v1587_v15 = vpack.c.bf16 %v1583_v13, %v1583_v13 }
 0x1bb   :  { %1883 = vmatprep.mubr.bf16.mxu0 %v1585_v14  ;;  %1923 = vmatprep.mubr.bf16.mxu1 %v1587_v15 }
 0x1bc   :  { %1884 = vmatmul.mubr.bf16.vlgmr.msra.gmra.mrb[4].mxu0 %v1584_v16  ;;  %1924 = vmatmul.mubr.bf16.vlgmr.msra.gmra.mrb[4].mxu1 %v1586_v17 }
 0x28f   :  { %v2194_v18 = vpop.f32.mrb[4].mxu0  ;;  %v2216_v19 = vpop.f32.mrb[4].mxu1 }
 0x290   :  { %v2195_v21 = vpop.f32.mrb[5].mxu0  ;;  %v2217_v22 = vpop.f32.mrb[5].mxu1 }
 0x291   :  { %v2196_v23 = vadd.f32 %v2195_v21, %v2194_v18  ;;  %v2218_v24 = vadd.f32 %v2217_v22, %v2216_v19  ;;  %v2197_v25 = vpop.f32.mrb[6].mxu0  ;;  %v2219_v26 = vpop.f32.mrb[6].mxu1 }
 0x292   :  { %v2198_v27 = vpop.f32.mrb[7].mxu0  ;;  %v2220_v28 = vpop.f32.mrb[7].mxu1 }
 0x293   :  { %v1886_v29 = vadd.f32 %v2196_v23, %v2145_v20 }
 0x295   :  { %v1926_v30 = vadd.f32 %v2218_v24, %v1886_v29 }
 0x297   :  { %1931 = vst [vmem:[#allocation5] sm:$0xff] %v1926_v30 }
 0x298   :  { %2614 = shalt.err (!%p2611_p12)
}
 0x299   :  { %s2615_s9 = scalar_lea.hbm %s2816_s5, 128 }
 0x29a   :  { %p2616_p13 = scmp.ne.s32.totalorder %s2816_s5, %s2615_s9  ;;  %p2619_p0 = scmp.lt.u32.totalorder %s2615_s9, %s2816_s5 }
 0x29c   :  { %p2621_p1 = pnand %p2619_p0, %p2616_p13 }
 0x29e   :  { %2624 = shalt.err (!%p2621_p1)
}
 0x29f   :  { %1941 = dma.vmem_to_hbm [thread:$0]  %s1939_s1, 128, %s2816_s5, [#allocation4]  }
 0x2a0   :  { %2627 = dma.done.wait [#allocation4], 128  }
 0x2a1   :  { %2628 = vsyncadd [#allocation4], 4294967168 }
 0x2a2   :  { %1945 = vsyncpa [#allocation3], 1 }
 0x2a3   :  { %1946 = vsyncpa [#allocation4], 1 }

</bundles_post_ra>
